<compile_context>
chip_gen: v7x
topology: tpu7x:2x2x1
jax: 0.10.0
libtpu: 0.0.40
codegen_flags: <defaults>
</compile_context>

<pallas_src>
import functools

import jax
import jax.numpy as jnp
from jax.experimental import pallas as pl
from jax.experimental.pallas import tpu as pltpu


# ----------------------------------------------------------------------------
# Helpers
# ----------------------------------------------------------------------------
def _round_up(n, m):
    return ((n + m - 1) // m) * m


def _choose_f_tile(hidden, ffh, itemsize, budget_bytes=24 * 1024 * 1024):
    """Pick an F tile so 3 weight tiles (up/gate/down), double-buffered, fit
    within `budget_bytes` of VMEM (sized conservatively for v7x's 64 MiB)."""
    cap = max(128, budget_bytes // (6 * hidden * itemsize))
    if ffh <= cap:
        return ffh
    t = (cap // 128) * 128
    while t >= 128:
        if ffh % t == 0:
            return t
        t -= 128
    # TODO(synk): no 128-multiple divisor of F <= cap; fall back to whole F
    # (would need F padding in the wrapper for truly awkward large shapes).
    return ffh


# ----------------------------------------------------------------------------
# Kernel factory
# ----------------------------------------------------------------------------
def _make_kernel(*, activation, lora_scale, mxu_dtype, has_lora, has_dropout):
    """Build a kernel specialized (at trace time) on activation / LoRA / dropout.

    Ref order: x, up, gate, down, [lora_A, lora_B, [mask]], out, acc_scratch.
    Grid: (token_tiles, f_tiles); the F axis is the reduction (inner) axis.
    """

    def kernel(*refs):
        idx = 0
        x_ref = refs[idx]; idx += 1
        up_ref = refs[idx]; idx += 1
        gate_ref = refs[idx]; idx += 1
        down_ref = refs[idx]; idx += 1
        la_ref = lb_ref = mask_ref = None
        if has_lora:
            la_ref = refs[idx]; idx += 1
            lb_ref = refs[idx]; idx += 1
            if has_dropout:
                mask_ref = refs[idx]; idx += 1
        o_ref = refs[idx]; idx += 1
        acc_ref = refs[idx]

        f = pl.program_id(1)
        nf = pl.num_programs(1)

        x = x_ref[...]                                   # (tm, H) in mxu_dtype

        # --- init accumulator once per token tile (LoRA is F-independent) ---
        @pl.when(f == 0)
        def _init():
            if has_lora:
                xa = jnp.dot(x, la_ref[...],
                             preferred_element_type=jnp.float32)       # (tm, r)
                lora = jnp.dot(xa.astype(mxu_dtype), lb_ref[...],
                               preferred_element_type=jnp.float32)     # (tm, H)
                lora = lora_scale * lora   # lora_scale already folds 1/keep_prob
                if has_dropout:
                    lora = lora * mask_ref[...].astype(jnp.float32)
                acc_ref[...] = lora
            else:
                acc_ref[...] = jnp.zeros_like(acc_ref)

        # --- main GLU path for this F tile (MXU, f32 accumulation) ---
        up = jnp.dot(x, up_ref[...], preferred_element_type=jnp.float32)    # (tm, tf)
        gate = jnp.dot(x, gate_ref[...], preferred_element_type=jnp.float32)

        if activation == "silu":
            act = jax.nn.silu(gate)
        elif activation == "gelu":
            act = jax.nn.gelu(gate, approximate=False)   # match F.gelu (erf)
        elif activation == "relu":
            act = jnp.maximum(gate, 0.0)
        elif activation == "sigmoid":
            act = jax.nn.sigmoid(gate)
        elif activation == "bilinear":
            act = gate
        else:
            raise ValueError(f"unknown activation {activation!r}")

        h = (act * up).astype(mxu_dtype)                                    # (tm, tf)
        acc_ref[...] += jnp.dot(h, down_ref[...],
                                preferred_element_type=jnp.float32)         # (tm, H)

        # --- finalize ---
        @pl.when(f == nf - 1)
        def _store():
            o_ref[...] = acc_ref[...].astype(o_ref.dtype)

    return kernel


# ----------------------------------------------------------------------------
# Wrapper
# ----------------------------------------------------------------------------
def dense_mlp_with_lora(x, up_proj, gate_proj, down_proj,
                        lora_A=None, lora_B=None, dropout_mask=None, *,
                        activation="silu", lora_scaling=1.0, keep_prob=1.0,
                        tm=256, tf=None, mxu_dtype=jnp.bfloat16,
                        vmem_limit_bytes=48 * 1024 * 1024):
    """x: [B, S, H] -> [B, S, H]; semantics match DenseMLPWithLoRA.forward."""
    orig_dtype = x.dtype
    B, S, H = x.shape
    F = up_proj.shape[1]
    N = B * S

    has_lora = (lora_A is not None) and (lora_B is not None) and lora_A.shape[1] > 0
    has_dropout = has_lora and (dropout_mask is not None) and (float(keep_prob) < 1.0)

    # ---- token tiling (pad ragged N; padded rows are zeros and sliced off) ----
    n_pad8 = _round_up(max(N, 8), 8)
    tm_eff = min(max(8, (tm // 8) * 8), n_pad8)
    N_pad = _round_up(N, tm_eff)

    # ---- F tiling sized for VMEM (conservative for v7x's 64 MiB per TC) ----
    itemsize = jnp.dtype(mxu_dtype).itemsize
    if tf is None:
        tf = _choose_f_tile(H, F, itemsize)
    assert F % tf == 0, "F tile must divide ffh_size"

    # ---- cast once in the wrapper: halves HBM traffic for x and all weights ----
    x2 = x.reshape(N, H).astype(mxu_dtype)
    if N_pad != N:
        x2 = jnp.pad(x2, ((0, N_pad - N), (0, 0)))

    operands = [x2,
                up_proj.astype(mxu_dtype),
                gate_proj.astype(mxu_dtype),
                down_proj.astype(mxu_dtype)]
    in_specs = [
        pl.BlockSpec((tm_eff, H), lambda i, f: (i, 0)),   # x tile (not re-DMA'd per f)
        pl.BlockSpec((H, tf), lambda i, f: (0, f)),       # up_proj F-tile
        pl.BlockSpec((H, tf), lambda i, f: (0, f)),       # gate_proj F-tile
        pl.BlockSpec((tf, H), lambda i, f: (f, 0)),       # down_proj F-tile
    ]

    if has_lora:
        r = lora_A.shape[1]
        operands += [lora_A.astype(mxu_dtype), lora_B.astype(mxu_dtype)]
        in_specs += [
            pl.BlockSpec((H, r), lambda i, f: (0, 0)),    # lora_A (tiny, whole)
            pl.BlockSpec((r, H), lambda i, f: (0, 0)),    # lora_B (tiny, whole)
        ]
        if has_dropout:
            m2 = dropout_mask.reshape(N, H).astype(mxu_dtype)
            if N_pad != N:
                m2 = jnp.pad(m2, ((0, N_pad - N), (0, 0)))
            operands.append(m2)
            in_specs.append(pl.BlockSpec((tm_eff, H), lambda i, f: (i, 0)))

    # Fold 1/keep_prob into the scaling constant (no per-element divide).
    lora_scale = float(lora_scaling) / float(keep_prob) if has_dropout else float(lora_scaling)

    kernel = _make_kernel(activation=activation, lora_scale=lora_scale,
                          mxu_dtype=mxu_dtype, has_lora=has_lora,
                          has_dropout=has_dropout)

    out2 = pl.pallas_call(
        kernel,
        out_shape=jax.ShapeDtypeStruct((N_pad, H), orig_dtype),
        grid_spec=pltpu.PrefetchScalarGridSpec(
            num_scalar_prefetch=0,
            grid=(N_pad // tm_eff, F // tf),              # reduction axis last
            in_specs=in_specs,
            out_specs=pl.BlockSpec((tm_eff, H), lambda i, f: (i, 0)),
            scratch_shapes=[pltpu.VMEM((tm_eff, H), jnp.float32)],
        ),
        compiler_params=pltpu.CompilerParams(
            dimension_semantics=("parallel", "arbitrary"),
            vmem_limit_bytes=int(vmem_limit_bytes)),
    )(*operands)

    if N_pad != N:
        out2 = out2[:N]
    return out2.reshape(B, S, H)


# ----------------------------------------------------------------------------
# Deterministic parameter init (mirrors shapes / init families of the module;
# exact torch RNG streams are not reproduced).
# ----------------------------------------------------------------------------
def init_params(key, hidden_size, ffh_size, lora_rank, dtype=jnp.float32):
    k1, k2, k3, k4, k5 = jax.random.split(key, 5)
    std_up = (2.0 / hidden_size) ** 0.5      # kaiming_normal fan_in on W.t()
    std_down = (2.0 / ffh_size) ** 0.5
    up_proj = std_up * jax.random.normal(k1, (hidden_size, ffh_size), dtype)
    gate_proj = std_up * jax.random.normal(k2, (hidden_size, ffh_size), dtype)
    down_proj = std_down * jax.random.normal(k3, (ffh_size, hidden_size), dtype)
    bound_a = (6.0 / hidden_size) ** 0.5     # kaiming_uniform fan_in on A.t()/B.t()
    bound_b = (6.0 / max(lora_rank, 1)) ** 0.5
    lora_A = jax.random.uniform(k4, (hidden_size, lora_rank), dtype,
                                minval=-bound_a, maxval=bound_a)
    lora_B = jax.random.uniform(k5, (lora_rank, hidden_size), dtype,
                                minval=-bound_b, maxval=bound_b)
    return up_proj, gate_proj, down_proj, lora_A, lora_B


# ----------------------------------------------------------------------------
# Pure-JAX reference (mirrors the kernel's matmul-dtype casts so tolerances
# stay tight in bf16 mode).
# ----------------------------------------------------------------------------
def reference(x, up, gate_w, down, la, lb, mask, scaling, keep_prob,
              activation="silu", matmul_dtype=None):
    cast = (lambda a: a) if matmul_dtype is None else (lambda a: a.astype(matmul_dtype))

    def mm(a, b):
        return jnp.dot(cast(a), cast(b), preferred_element_type=jnp.float32)

    u = mm(x, up)
    g = mm(x, gate_w)
    if activation == "silu":
        act = jax.nn.silu(g)
    elif activation == "gelu":
        act = jax.nn.gelu(g, approximate=False)
    elif activation == "relu":
        act = jnp.maximum(g, 0.0)
    elif activation == "sigmoid":
        act = jax.nn.sigmoid(g)
    else:
        act = g
    out = mm(act * u, down)
    if la is not None and la.shape[1] > 0:
        lora = scaling * mm(mm(x, la), lb)
        if mask is not None and keep_prob < 1.0:
            lora = lora * mask.astype(jnp.float32) / keep_prob
        out = out + lora
    return out


# ----------------------------------------------------------------------------
# Self-test
# ----------------------------------------------------------------------------
if __name__ == "__main__":
    batch, seq, hidden, ffh, rank = 2, 8, 128, 256, 4
    lora_alpha = float(rank)                  # module default: alpha = rank
    lora_scaling = lora_alpha / rank

    key = jax.random.PRNGKey(0)
    kx, kp, kd = jax.random.split(key, 3)

    x = jax.random.normal(kx, (batch, seq, hidden), jnp.float32)
    up_proj, gate_proj, down_proj, lora_A, lora_B = init_params(kp, hidden, ffh, rank)
    x2d = x.reshape(-1, hidden)

    # --- Test 1: f32 MXU path, no dropout, tf=128 to exercise the F reduction loop
    out1 = dense_mlp_with_lora(
        x, up_proj, gate_proj, down_proj, lora_A, lora_B, None,
        activation="silu", lora_scaling=lora_scaling, keep_prob=1.0,
        tm=256, tf=128, mxu_dtype=jnp.float32)
    out1 = jax.block_until_ready(out1)
    ref1 = reference(x2d, up_proj, gate_proj, down_proj, lora_A, lora_B,
                     None, lora_scaling, 1.0, activation="silu",
                     matmul_dtype=None).reshape(batch, seq, hidden)
    assert out1.shape == (batch, seq, hidden)
    assert jnp.allclose(out1, ref1, atol=1e-4, rtol=1e-4), "f32 path mismatch"

    # --- Test 2: bf16 MXU path with LoRA dropout (mask generated host-side) ---
    # TODO(synk): torch.manual_seed-driven nn.Dropout RNG stream is not
    # reproducible in JAX; a jax.random Bernoulli mask is used instead.
    drop_rate = 0.5
    keep_prob = 1.0 - drop_rate
    mask = jax.random.bernoulli(kd, p=keep_prob,
                                shape=(batch, seq, hidden)).astype(jnp.float32)
    out2 = dense_mlp_with_lora(
        x, up_proj, gate_proj, down_proj, lora_A, lora_B, mask,
        activation="gelu", lora_scaling=lora_scaling, keep_prob=keep_prob,
        tm=256, tf=None, mxu_dtype=jnp.bfloat16)
    out2 = jax.block_until_ready(out2)
    ref2 = reference(x2d, up_proj, gate_proj, down_proj, lora_A, lora_B,
                     mask.reshape(-1, hidden), lora_scaling, keep_prob,
                     activation="gelu",
                     matmul_dtype=jnp.bfloat16).reshape(batch, seq, hidden)
    assert jnp.allclose(out2, ref2, atol=2e-2, rtol=2e-2), "bf16 path mismatch"

    # --- Test 3: lora_rank == 0 (no LoRA branch at all) ---
    out3 = dense_mlp_with_lora(
        x, up_proj, gate_proj, down_proj, None, None, None,
        activation="relu", tm=256, tf=128, mxu_dtype=jnp.float32)
    out3 = jax.block_until_ready(out3)
    ref3 = reference(x2d, up_proj, gate_proj, down_proj, None, None, None,
                     1.0, 1.0, activation="relu").reshape(batch, seq, hidden)
    assert jnp.allclose(out3, ref3, atol=1e-4, rtol=1e-4), "no-LoRA path mismatch"

    print("KERNEL_OK")
</pallas_src>

<mosaic_0001>
module attributes {stable_mosaic.version = 11 : i64} {
  func.func @kernel(%arg0: i32, %arg1: i32, %arg2: memref<16x128xf32, #tpu.memory_space<vmem>>, %arg3: memref<128x128xf32, #tpu.memory_space<vmem>>, %arg4: memref<128x128xf32, #tpu.memory_space<vmem>>, %arg5: memref<128x128xf32, #tpu.memory_space<vmem>>, %arg6: memref<128x4xf32, #tpu.memory_space<vmem>>, %arg7: memref<4x128xf32, #tpu.memory_space<vmem>>, %arg8: memref<16x128xf32, #tpu.memory_space<vmem>>, %arg9: memref<16x128xf32, #tpu.memory_space<vmem>>) attributes {dimension_semantics = [#tpu.dimension_semantics<parallel>, #tpu.dimension_semantics<arbitrary>], iteration_bounds = array<i64: 1, 2>, scalar_prefetch = 0 : i64, scratch_operands = 1 : i64, tpu.core_type = #tpu.core_type<tc>, window_params = [{transform_indices = @transform_0, window_bounds = array<i64: 16, 128>}, {transform_indices = @transform_1, window_bounds = array<i64: 128, 128>}, {transform_indices = @transform_2, window_bounds = array<i64: 128, 128>}, {transform_indices = @transform_3, window_bounds = array<i64: 128, 128>}, {pipeline_mode = #tpu.pipeline_mode<synchronous>, transform_indices = @transform_4, window_bounds = array<i64: 128, 4>}, {pipeline_mode = #tpu.pipeline_mode<synchronous>, transform_indices = @transform_5, window_bounds = array<i64: 4, 128>}, {transform_indices = @transform_6, window_bounds = array<i64: 16, 128>}]} {
    %c0 = arith.constant 0 : index
    %c0_0 = arith.constant 0 : index
    %0 = vector.load %arg2[%c0, %c0_0] : memref<16x128xf32, #tpu.memory_space<vmem>>, vector<16x128xf32>
    %c0_i32 = arith.constant 0 : i32
    %1 = arith.cmpi eq, %arg1, %c0_i32 : i32
    %2 = arith.extui %1 : i1 to i32
    %c0_i32_1 = arith.constant 0 : i32
    %3 = arith.cmpi ne, %2, %c0_i32_1 : i32
    scf.if %3 {
      %c0_16 = arith.constant 0 : index
      %c0_17 = arith.constant 0 : index
      %23 = vector.load %arg6[%c0_16, %c0_17] : memref<128x4xf32, #tpu.memory_space<vmem>>, vector<128x4xf32>
      %cst_18 = arith.constant dense<0.000000e+00> : vector<16x4xf32>
      %24 = tpu.matmul %0, %23, %cst_18 {dimension_numbers = #tpu.dot_dimension_numbers<[1], [0], [0], [1], [0, 0, 1, 1], [], []>} : vector<16x128xf32>, vector<128x4xf32>, vector<16x4xf32> -> vector<16x4xf32>
      %c0_19 = arith.constant 0 : index
      %c0_20 = arith.constant 0 : index
      %25 = vector.load %arg7[%c0_19, %c0_20] : memref<4x128xf32, #tpu.memory_space<vmem>>, vector<4x128xf32>
      %cst_21 = arith.constant dense<0.000000e+00> : vector<16x128xf32>
      %26 = tpu.matmul %24, %25, %cst_21 {dimension_numbers = #tpu.dot_dimension_numbers<[1], [0], [0], [1], [0, 0, 1, 1], [], []>} : vector<16x4xf32>, vector<4x128xf32>, vector<16x128xf32> -> vector<16x128xf32>
      %cst_22 = arith.constant 1.000000e+00 : f32
      %27 = vector.broadcast %cst_22 : f32 to vector<16x128xf32>
      %28 = arith.mulf %27, %26 : vector<16x128xf32>
      %c0_23 = arith.constant 0 : index
      %c0_24 = arith.constant 0 : index
      %29 = vector.load %arg9[%c0_23, %c0_24] : memref<16x128xf32, #tpu.memory_space<vmem>>, vector<16x128xf32>
      tpu.vector_store %arg9[%c0_23, %c0_24], %28 {strides = array<i32>} : memref<16x128xf32, #tpu.memory_space<vmem>>, vector<16x128xf32>,
    } else {
    }
    %c0_2 = arith.constant 0 : index
    %c0_3 = arith.constant 0 : index
    %4 = vector.load %arg3[%c0_2, %c0_3] : memref<128x128xf32, #tpu.memory_space<vmem>>, vector<128x128xf32>
    %cst = arith.constant dense<0.000000e+00> : vector<16x128xf32>
    %5 = tpu.matmul %0, %4, %cst {dimension_numbers = #tpu.dot_dimension_numbers<[1], [0], [0], [1], [0, 0, 1, 1], [], []>} : vector<16x128xf32>, vector<128x128xf32>, vector<16x128xf32> -> vector<16x128xf32>
    %c0_4 = arith.constant 0 : index
    %c0_5 = arith.constant 0 : index
    %6 = vector.load %arg4[%c0_4, %c0_5] : memref<128x128xf32, #tpu.memory_space<vmem>>, vector<128x128xf32>
    %cst_6 = arith.constant dense<0.000000e+00> : vector<16x128xf32>
    %7 = tpu.matmul %0, %6, %cst_6 {dimension_numbers = #tpu.dot_dimension_numbers<[1], [0], [0], [1], [0, 0, 1, 1], [], []>} : vector<16x128xf32>, vector<128x128xf32>, vector<16x128xf32> -> vector<16x128xf32>
    %8 = arith.negf %7 : vector<16x128xf32>
    %9 = math.exp %8 : vector<16x128xf32>
    %cst_7 = arith.constant 1.000000e+00 : f32
    %10 = vector.broadcast %cst_7 : f32 to vector<16x128xf32>
    %11 = arith.addf %10, %9 : vector<16x128xf32>
    %12 = arith.divf %10, %11 : vector<16x128xf32>
    %13 = arith.mulf %7, %12 : vector<16x128xf32>
    %14 = arith.mulf %13, %5 : vector<16x128xf32>
    %c0_8 = arith.constant 0 : index
    %c0_9 = arith.constant 0 : index
    %15 = vector.load %arg9[%c0_8, %c0_9] : memref<16x128xf32, #tpu.memory_space<vmem>>, vector<16x128xf32>
    %c0_10 = arith.constant 0 : index
    %c0_11 = arith.constant 0 : index
    %16 = vector.load %arg5[%c0_10, %c0_11] : memref<128x128xf32, #tpu.memory_space<vmem>>, vector<128x128xf32>
    %cst_12 = arith.constant dense<0.000000e+00> : vector<16x128xf32>
    %17 = tpu.matmul %14, %16, %cst_12 {dimension_numbers = #tpu.dot_dimension_numbers<[1], [0], [0], [1], [0, 0, 1, 1], [], []>} : vector<16x128xf32>, vector<128x128xf32>, vector<16x128xf32> -> vector<16x128xf32>
    %18 = arith.addf %15, %17 : vector<16x128xf32>
    %c0_13 = arith.constant 0 : index
    %c0_14 = arith.constant 0 : index
    %19 = vector.load %arg9[%c0_13, %c0_14] : memref<16x128xf32, #tpu.memory_space<vmem>>, vector<16x128xf32>
    tpu.vector_store %arg9[%c0_13, %c0_14], %18 {strides = array<i32>} : memref<16x128xf32, #tpu.memory_space<vmem>>, vector<16x128xf32>,
    %c1_i32 = arith.constant 1 : i32
    %20 = arith.cmpi eq, %arg1, %c1_i32 : i32
    %21 = arith.extui %20 : i1 to i32
    %c0_i32_15 = arith.constant 0 : i32
    %22 = arith.cmpi ne, %21, %c0_i32_15 : i32
    scf.if %22 {
      %c0_16 = arith.constant 0 : index
      %c0_17 = arith.constant 0 : index
      %23 = vector.load %arg9[%c0_16, %c0_17] : memref<16x128xf32, #tpu.memory_space<vmem>>, vector<16x128xf32>
      %c0_18 = arith.constant 0 : index
      %c0_19 = arith.constant 0 : index
      %24 = vector.load %arg8[%c0_18, %c0_19] : memref<16x128xf32, #tpu.memory_space<vmem>>, vector<16x128xf32>
      tpu.vector_store %arg8[%c0_18, %c0_19], %23 {strides = array<i32>} : memref<16x128xf32, #tpu.memory_space<vmem>>, vector<16x128xf32>,
    } else {
    }
    return
  }
  func.func @transform_0(%arg0: i32, %arg1: i32) -> (i32, i32) {
    %c0_i32 = arith.constant 0 : i32
    %c0_i32_0 = arith.constant 0 : i32
    return %arg0, %c0_i32 : i32, i32
  }
  func.func @transform_1(%arg0: i32, %arg1: i32) -> (i32, i32) {
    %c0_i32 = arith.constant 0 : i32
    %c0_i32_0 = arith.constant 0 : i32
    return %c0_i32, %arg1 : i32, i32
  }
  func.func @transform_2(%arg0: i32, %arg1: i32) -> (i32, i32) {
    %c0_i32 = arith.constant 0 : i32
    %c0_i32_0 = arith.constant 0 : i32
    return %c0_i32, %arg1 : i32, i32
  }
  func.func @transform_3(%arg0: i32, %arg1: i32) -> (i32, i32) {
    %c0_i32 = arith.constant 0 : i32
    %c0_i32_0 = arith.constant 0 : i32
    return %arg1, %c0_i32 : i32, i32
  }
  func.func @transform_4(%arg0: i32, %arg1: i32) -> (i32, i32) {
    %c0_i32 = arith.constant 0 : i32
    %c0_i32_0 = arith.constant 0 : i32
    %c0_i32_1 = arith.constant 0 : i32
    return %c0_i32, %c0_i32_0 : i32, i32
  }
  func.func @transform_5(%arg0: i32, %arg1: i32) -> (i32, i32) {
    %c0_i32 = arith.constant 0 : i32
    %c0_i32_0 = arith.constant 0 : i32
    %c0_i32_1 = arith.constant 0 : i32
    return %c0_i32, %c0_i32_0 : i32, i32
  }
  func.func @transform_6(%arg0: i32, %arg1: i32) -> (i32, i32) {
    %c0_i32 = arith.constant 0 : i32
    %c0_i32_0 = arith.constant 0 : i32
    return %arg0, %c0_i32 : i32, i32
  }
}

</mosaic_0001>

<bundles_post_ra>
// kernel: tpu_custom_call.1
= control target key start
LH: loop header
LB: loop body
LE: loop exit
PB: predicated region body
PF: predicated region fallthrough
CT: control target
= control target key end

     0   :  { %s2039_s0 = inlined_call_operand.vmem [shape: f32[16,128], index: 0, kind: input, shape index: {}]   ;;  %s2040_s1 = inlined_call_operand.hbm [shape: f32[128,256], index: 1, kind: input, shape index: {}]   ;;  %s2041_s2 = inlined_call_operand.hbm [shape: f32[128,256], index: 2, kind: input, shape index: {}]   ;;  %s2042_s3 = inlined_call_operand.hbm [shape: f32[256,128], index: 3, kind: input, shape index: {}]   ;;  %s2043_s4 = inlined_call_operand.vmem [shape: f32[128,4], index: 4, kind: input, shape index: {}]   ;;  %s2044_s5 = inlined_call_operand.vmem [shape: f32[4,128], index: 5, kind: input, shape index: {}]   ;;  %s2045_s6 = inlined_call_operand.hbm [shape: f32[16,128], index: 6, kind: output, shape index: {}]  }
   0x1   :  { %2054 = sst [smem:[#allocation14_spill]] %s2040_s1 }
   0x2   :  { %2055 = sst [smem:[#allocation15_spill]] %s2041_s2 }
   0x3   :  { %11 = vsyncpa [#allocation4], 0 }
   0x4   :  { %13 = vsyncpa [#allocation4 + $0x1], 0 }
   0x5   :  { %14 = vsyncpa [#allocation7], 0 }
   0x6   :  { %16 = vsyncpa [#allocation7 + $0x1], 0 }
   0x7   :  { %17 = vsyncpa [#allocation5], 0  ;;  %s1674_s21 = smov 0   ;;  %s1676_s22 = smov 0  }
   0x8   :  { %s1678_s23 = smov 0   ;;  %s1680_s24 = smov 0  }
   0x9   :  { %s1682_s25 = smov 0   ;;  %s1684_s26 = smov 0  }
   0xa LB: > { %s1703_s27 = sadd.s32 4294967295, %s1628_s26   ;;  %s32_s28 = sadd.s32 1, %s1624_s25  ;;  %s1628_s26 = sphi %s1684_s26, %s23_s26   ;;  %s1624_s25 = sphi %s1682_s25, %s2076_s25   ;;  %s1620_s24 = sphi %s1680_s24, %s2075_s24   ;;  %s1616_s23 = sphi %s1678_s23, %s2074_s23   ;;  %s1612_s22 = sphi %s1676_s22, %s2073_s22   ;;  %s1608_s21 = sphi %s1674_s21, %s2072_s21  }
   0xb   : > { %p33_p0 = scmp.ge.s32.totalorder %s32_s28, 2  ;;  %s68_s29 = sadd.s32 1, %s1616_s23 }
   0xc   : > { %p75_p1 = scmp.ne.s32.totalorder %s1616_s23, %s1612_s22  ;;  %p76_p2 = scmp.eq.s32.totalorder %s1628_s26, 0 }
   0xd   : > { %s2078_s28 = smov (%p33_p0, %s32_s28), 0  ;;  %p81_p4 = scmp.ne.s32.totalorder %s1612_s22, %s1608_s21 }
   0xe   : > { %2056 = sst [smem:[#allocation13_spill]] %s2078_s28  ;;  %p77_p3 = por %p76_p2, %p75_p1 }
   0xf   : > { %s65_s30 = ssub.s32 %s1624_s25, %s2078_s28  ;;  %p82_p5 = scmp.eq.s32.totalorder %s1703_s27, 0 }
  0x10   : > { %p66_p6 = scmp.eq.s32.totalorder %s65_s30, 0  ;;  %p1389_p8 = scmp.lt.s32.totalorder %s1628_s26, 2 }
  0x11   : > { %p1716_p7 = por %p82_p5, %p81_p4  ;;  %s2047_s9 = sand.u32 1, %s1616_s23  }
  0x12   : > { %s1722_s8 = scalar_select %p66_p6, %s1616_s23, %s68_s29  }
  0x13   : > { %s2057_s7 = scalar_select %p1716_p7, 1, 0 }
  0x14   : > { %s999_s10 = sshll.u32 %s1624_s25, 7  ;;  %s1728_s11 = sshll.u32 %s2047_s9, 7 }
  0x15   : > { %p1730_p9 = pnand %p1389_p8, %p77_p3  ;;  %s260_s13 = sand.u32 1, %s1628_s26  }
  0x16   : > { %s2059_s2 = sld [smem:[#allocation15_spill]]  ;;  %s264_s17 = scalar_lea.vmem [#allocation6], %s1728_s11 }
  0x17   : > { %s270_s18 = sshll.u32 %s264_s17, 4  ;;  %s1747_s19 = scalar_lea.sflag [#allocation7], %s260_s13  ;;  %s1744_s18 = int_to_ptr.vmem [resolvable:$true] %s270_s18 }
  0x18   : > { %p1753_p13 = pneg %p1730_p9 }
  0x1c   : > { %s1740_s16 = scalar_lea.hbm %s2059_s2, %s999_s10  ;;  %s1459_s14 = scalar_lea.hbm %s2059_s2, 4096 }
  0x1d   : > { %s1454_s20 = scalar_lea.hbm %s1740_s16, 2048  ;;  %p1460_p2 = scmp.lt.u32.totalorder %s1740_s16, %s2059_s2 }
  0x1e   : > { %p1455_p12 = scmp.ne.s32.totalorder %s1740_s16, %s1454_s20  ;;  %p1461_p3 = scmp.lt.u32.totalorder %s1459_s14, %s1454_s20 }
  0x1f   : > { %p1463_p5 = scmp.lt.u32.totalorder %s1454_s20, %s1740_s16 }
  0x20   : > { %p1457_p0 = pnand %p1753_p13, %p1455_p12  ;;  %p1462_p4 = por %p1461_p3, %p1460_p2 }
  0x22   : > { %p1458_p1 = pneg %p1457_p0  ;;  %p1464_p6 = por %p1463_p5, %p1462_p4 }
  0x24   : > { %p1465_p8 = pnand %p1464_p6, %p1458_p1 }
  0x26   : > { %1468 = shalt.err (!%p1465_p8)
}
  0x27   : > { %s1469_s13 = scalar_lea.vmem %s1744_s18, 2048  ;;  %s1630_s29 = smov [#allocation6]  }
  0x28   : > { %p1470_p12 = scmp.ne.s32.totalorder %s1744_s18, %s1469_s13  ;;  %s1474_s30 = sshll.u32 %s1630_s29, 4  ;;  %s1475_s30 = int_to_ptr.vmem [resolvable:$false] %s1474_s30 }
  0x29   : > { %s1476_s15 = scalar_lea.vmem %s1475_s30, 4096  ;;  %p1477_p11 = scmp.lt.s32.totalorder %s1744_s18, %s1475_s30 }
  0x2a   : > { %p1472_p0 = pnand %p1470_p12, %p1753_p13  ;;  %p1478_p7 = scmp.lt.s32.totalorder %s1476_s15, %s1469_s13 }
  0x2c   : > { %p1473_p10 = pneg %p1472_p0  ;;  %p1479_p2 = por %p1478_p7, %p1477_p11 }
  0x2e   : > { %p1480_p3 = pnand %p1479_p2, %p1473_p10 }
  0x30   : > { %1483 = shalt.err (!%p1480_p3)
}
  0x31   : > { %s2048_s20 = smov 256   ;;  %s2049_s14 = smov 128  }
  0x32   : > { %s2051_s17 = smov 8   ;;  %p2061_p7 = scmp.lt.s32.totalorder %s1628_s26, 3 }
  0x33   : > { %1385 = dma.hbm_to_vmem [thread:$0]  (!%p1730_p9), %s1740_s16, 2048, %s1744_s18, %s1747_s19, %s2048_s20, %s2049_s14, %s2051_s17  }
  0x34   : > { %p2062_p10 = scmp.ge.s32.totalorder %s1628_s26, 1  ;;  %s2064_s1 = sld [smem:[#allocation14_spill]] }
  0x35   : > { %s244_s9 = scalar_lea.vmem [#allocation3], %s1728_s11  ;;  %s1020_s16 = sshll.u32 %s1624_s25, 11 }
  0x36   : > { %p1784_p11 = pnand %p2062_p10, %p2061_p7  ;;  %s250_s2 = sshll.u32 %s244_s9, 4  ;;  %s1796_s2 = int_to_ptr.vmem [resolvable:$true] %s250_s2 }
  0x37   : > { %s2065_s18 = sand.u32 1, %s1616_s23  }
  0x38   : > { %s2063_s13 = scalar_select %p1784_p11, 1, 0 }
  0x39   : > { %s1801_s20 = scalar_lea.sflag [#allocation4], %s2065_s18 }
  0x3a   : > { %s1793_s15 = scalar_lea.hbm %s2064_s1, %s999_s10  ;;  %s1489_s30 = scalar_lea.hbm %s2064_s1, 4096 }
  0x3b   : > { %s1484_s14 = scalar_lea.hbm %s1793_s15, 2048  ;;  %p1490_p6 = scmp.lt.u32.totalorder %s1793_s15, %s2064_s1 }
  0x3c   : > { %p1485_p1 = scmp.ne.s32.totalorder %s1793_s15, %s1484_s14  ;;  %p1491_p8 = scmp.lt.u32.totalorder %s1489_s30, %s1484_s14 }
  0x3d   : > { %p1493_p0 = scmp.lt.u32.totalorder %s1484_s14, %s1793_s15 }
  0x3e   : > { %p1487_p4 = pnand %p1485_p1, %p1753_p13  ;;  %p1492_p12 = por %p1491_p8, %p1490_p6 }
  0x40   : > { %p1488_p5 = pneg %p1487_p4  ;;  %p1494_p2 = por %p1493_p0, %p1492_p12 }
  0x42   : > { %p1495_p3 = pnand %p1494_p2, %p1488_p5 }
  0x44   : > { %1498 = shalt.err (!%p1495_p3)
}
  0x45   : > { %s1499_s9 = scalar_lea.vmem %s1796_s2, 2048  ;;  %s1634_s18 = smov [#allocation3]  }
  0x46   : > { %p1500_p7 = scmp.ne.s32.totalorder %s1796_s2, %s1499_s9  ;;  %s1504_s29 = sshll.u32 %s1634_s18, 4  ;;  %s1505_s29 = int_to_ptr.vmem [resolvable:$false] %s1504_s29 }
  0x47   : > { %s1506_s28 = scalar_lea.vmem %s1505_s29, 4096  ;;  %p1507_p4 = scmp.lt.s32.totalorder %s1796_s2, %s1505_s29 }
  0x48   : > { %p1502_p10 = pnand %p1500_p7, %p1753_p13  ;;  %p1508_p11 = scmp.lt.s32.totalorder %s1506_s28, %s1499_s9 }
  0x4a   : > { %p1503_p1 = pneg %p1502_p10  ;;  %p1509_p6 = por %p1508_p11, %p1507_p4 }
  0x4c   : > { %p1510_p8 = pnand %p1509_p6, %p1503_p1 }
  0x4e   : > { %1513 = shalt.err (!%p1510_p8)
}
  0x4f   : > { %s2066_s14 = smov 8   ;;  %s2067_s17 = smov 128  }
  0x50   : > { %s2068_s10 = smov 256   ;;  %s1833_s9 = scalar_lea.hbm %s2042_s3, %s1020_s16 }
  0x51   : > { %1382 = dma.hbm_to_vmem [thread:$0]  (!%p1730_p9), %s1793_s15, 2048, %s1796_s2, %s1801_s20, %s2068_s10, %s2067_s17, %s2066_s14  }
  0x52   : > { %s284_s29 = scalar_lea.vmem [#allocation8], %s1728_s11  ;;  %s1514_s1 = scalar_lea.hbm %s1833_s9, 2048 }
  0x53   : > { %s291_s28 = sshll.u32 %s284_s29, 4  ;;  %p1515_p11 = scmp.ne.s32.totalorder %s1833_s9, %s1514_s1  ;;  %s1836_s28 = int_to_ptr.vmem [resolvable:$true] %s291_s28 }
  0x54   : > { %s1519_s15 = scalar_lea.hbm %s2042_s3, 4096  ;;  %p1520_p0 = scmp.lt.u32.totalorder %s1833_s9, %s2042_s3 }
  0x55   : > { %p1517_p5 = pnand %p1515_p11, %p1753_p13  ;;  %p1521_p2 = scmp.lt.u32.totalorder %s1519_s15, %s1514_s1 }
  0x56   : > { %p1523_p7 = scmp.lt.u32.totalorder %s1514_s1, %s1833_s9 }
  0x57   : > { %p1518_p12 = pneg %p1517_p5  ;;  %p1522_p3 = por %p1521_p2, %p1520_p0 }
  0x59   : > { %p1524_p10 = por %p1523_p7, %p1522_p3 }
  0x5b   : > { %p1525_p1 = pnand %p1524_p10, %p1518_p12 }
  0x5d   : > { %1528 = shalt.err (!%p1525_p1)
}
  0x5e   : > { %s1529_s11 = scalar_lea.vmem %s1836_s28, 2048  ;;  %s1635_s30 = smov [#allocation8]  }
  0x5f   : > { %p1530_p4 = scmp.ne.s32.totalorder %s1836_s28, %s1529_s11  ;;  %s1534_s18 = sshll.u32 %s1635_s30, 4  ;;  %s1535_s18 = int_to_ptr.vmem [resolvable:$false] %s1534_s18 }
  0x60   : > { %s1536_s29 = scalar_lea.vmem %s1535_s18, 4096  ;;  %p1537_p11 = scmp.lt.s32.totalorder %s1836_s28, %s1535_s18 }
  0x61   : > { %p1532_p6 = pnand %p1530_p4, %p1753_p13  ;;  %p1538_p5 = scmp.lt.s32.totalorder %s1536_s29, %s1529_s11 }
  0x63   : > { %p1533_p8 = pneg %p1532_p6  ;;  %p1539_p0 = por %p1538_p5, %p1537_p11 }
  0x65   : > { %p1540_p2 = pnand %p1539_p0, %p1533_p8 }
  0x67   : > { %1543 = shalt.err (!%p1540_p2)
}
  0x68   : > { %1388 = dma.hbm_to_vmem [thread:$0]  (!%p1730_p9), %s1833_s9, 2048, %s1836_s28, %s1747_s19, %s2067_s17, %s2067_s17, %s2066_s14  }
  0x69   : > { %p2069_p13 = scmp.ne.s32.totalorder %s2063_s13, 0 }
  0x6a   : > { %s305_s1 = sand.u32 (!%p2069_p13), 1, %s1612_s22   ;;  %p2070_p12 = scmp.ne.s32.totalorder (!%p2069_p13), %s2057_s7, 0 }
  0x6b   : > { %303 = sbr.rel (%p2069_p13) target bundleno = 1111 (0x457), region = 44  ;;  %s1006_s21 = sshll.u32 (!%p2069_p13), %s305_s1, 7 }
  0x6c   : > { %s306_s2 = scalar_lea.sflag (!%p2069_p13), [#allocation4], %s305_s1  ;;  %s1866_s20 = scalar_lea.vmem (!%p2069_p13), [#allocation3], %s1006_s21 }
  0x72   : > { %1595 = dma.done.wait (%p2070_p12), %s306_s2, 2048  }
  0x73   : > { %1597 = vsyncadd (%p2070_p12), %s306_s2, 4294965248  ;;  %s314_s12 = sand.u32 1, %s1703_s27   ;;  %s1873_s19 = scalar_lea.vmem [#allocation6], %s1006_s21 }
  0x74   : > { %s315_s15 = scalar_lea.sflag [#allocation7], %s314_s12 }
  0x75   : > { %1599 = dma.done.wait (%p2070_p12), %s315_s15, 4096  }
  0x76   : > { %1601 = vsyncadd (%p2070_p12), %s315_s15, 4294963200  ;;  %v1882_v0 = vld [vmem:[%s2039_s0] sm:$0xff]  ;;  %v1887_v1 = vld [vmem:[%s2039_s0 + $0x8] sm:$0xff]  ;;  %s1889_s28 = scalar_lea.vmem [#allocation8], %s1006_s21  ;;  %p1009_p9 = scmp.ne.s32.totalorder %s1620_s24, 0 }
  0x77   : > { %v380_v2 = vld [vmem:[%s2043_s4] sm:$0xff] (!%p1009_p9)  ;;  %v381_v3 = vld [vmem:[%s2043_s4 + $0x8] sm:$0xff] (!%p1009_p9)  ;;  %v382_v4 = vld [vmem:[%s2043_s4 + $0x10] sm:$0xff] (!%p1009_p9)  ;;  %1128 = vmatprep.mubr.f32.mxu0 (!%p1009_p9), %v1882_v0  ;;  %vm479_vm0 = vcmask (!%p1009_p9), 1043456   ;;  %vm472_vm1 = vcmask (!%p1009_p9), 31744  }
  0x78   : > { %379 = sbr.rel (%p1009_p9) target bundleno = 582 (0x246), region = 60  ;;  %v1241_v5 = vpack.c.bf16 (!%p1009_p9), %v381_v3, %v380_v2  ;;  %v383_v6 = vld [vmem:[%s2043_s4 + $0x18] sm:$0xff] (!%p1009_p9)  ;;  %v384_v8 = vld [vmem:[%s2043_s4 + $0x20] sm:$0xff] (!%p1009_p9)  ;;  %v385_v9 = vld [vmem:[%s2043_s4 + $0x28] sm:$0xff] (!%p1009_p9) }
  0x79   : > { %v1245_v7 = vpack.c.bf16 (!%p1009_p9), %v383_v6, %v382_v4  ;;  %v1249_v10 = vpack.c.bf16 (!%p1009_p9), %v385_v9, %v384_v8  ;;  %v386_v11 = vld [vmem:[%s2043_s4 + $0x30] sm:$0xff] (!%p1009_p9)  ;;  %v387_v12 = vld [vmem:[%s2043_s4 + $0x38] sm:$0xff] (!%p1009_p9)  ;;  %v388_v14 = vld [vmem:[%s2043_s4 + $0x40] sm:$0xff] (!%p1009_p9) }
  0x7a   : > { %1242 = vmatprep.subr.bf16.mxu0 (!%p1009_p9), %v1241_v5  ;;  %v1253_v13 = vpack.c.bf16 (!%p1009_p9), %v387_v12, %v386_v11  ;;  %v389_v15 = vld [vmem:[%s2043_s4 + $0x48] sm:$0xff] (!%p1009_p9)  ;;  %v390_v17 = vld [vmem:[%s2043_s4 + $0x50] sm:$0xff] (!%p1009_p9)  ;;  %v391_v18 = vld [vmem:[%s2043_s4 + $0x58] sm:$0xff] (!%p1009_p9) }
  0x7b   : > { %1244 = vmatpush3.bf16.msra.mxu0 (!%p1009_p9), %v1241_v5  ;;  %v1257_v16 = vpack.c.bf16 (!%p1009_p9), %v389_v15, %v388_v14  ;;  %v1261_v19 = vpack.c.bf16 (!%p1009_p9), %v391_v18, %v390_v17  ;;  %v392_v20 = vld [vmem:[%s2043_s4 + $0x60] sm:$0xff] (!%p1009_p9)  ;;  %v393_v21 = vld [vmem:[%s2043_s4 + $0x68] sm:$0xff] (!%p1009_p9)  ;;  %v394_v23 = vld [vmem:[%s2043_s4 + $0x70] sm:$0xff] (!%p1009_p9) }
  0x7c   : > { %1246 = vmatprep.subr.bf16.mxu0 (!%p1009_p9), %v1245_v7  ;;  %v1265_v22 = vpack.c.bf16 (!%p1009_p9), %v393_v21, %v392_v20  ;;  %v395_v24 = vld [vmem:[%s2043_s4 + $0x78] sm:$0xff] (!%p1009_p9)  ;;  %v471_v26 = vld [vmem:[%s2044_s5] sm:$0xf] (!%p1009_p9) }
  0x7d   : > { %v1269_v25 = vpack.c.bf16 (!%p1009_p9), %v395_v24, %v394_v23  ;;  %1131 = vmatprep.subr.msk.mxu1 (!%p1009_p9), %vm479_vm0, %v471_v26 }
  0x7e   : > { %1132 = vmatpush3.msk.msra.mxu1 (!%p1009_p9), %vm479_vm0, %v471_v26 }
  0x7f   : > { %1248 = vmatpush3.bf16.msra.mxu0 %v1245_v7 }
  0x80   : > { %1250 = vmatprep.subr.bf16.mxu0 %v1249_v10 }
  0x83   : > { %1252 = vmatpush3.bf16.msra.mxu0 %v1249_v10 }
  0x84   : > { %1254 = vmatprep.subr.bf16.mxu0 %v1253_v13 }
  0x87   : > { %1256 = vmatpush3.bf16.msra.mxu0 %v1253_v13 }
  0x88   : > { %1258 = vmatprep.subr.bf16.mxu0 %v1257_v16 }
  0x8b   : > { %1260 = vmatpush3.bf16.msra.mxu0 %v1257_v16 }
  0x8c   : > { %1262 = vmatprep.subr.bf16.mxu0 %v1261_v19 }
  0x8f   : > { %1264 = vmatpush3.bf16.msra.mxu0 %v1261_v19 }
  0x90   : > { %1266 = vmatprep.subr.bf16.mxu0 %v1265_v22 }
  0x93   : > { %1268 = vmatpush3.bf16.msra.mxu0 %v1265_v22 }
  0x94   : > { %1270 = vmatprep.subr.bf16.mxu0 %v1269_v25 }
  0x97   : > { %1272 = vmatpush3.bf16.msra.mxu0 %v1269_v25 }
  0x9a   : > { %1129 = vmatmul.mubr.f32.vlgmr.msra.gmra.mrb[0].mxu0 %v1887_v1 }
 0x16d   : > { %v1130_v27 = vpop.f32.mrb[0].mxu0 }
 0x16e   : > { %v462_v28 = vpop.f32.mrb[1].mxu0 }
 0x16f   : > { %1133 = vmatprep.mubr.msk.f32.mxu1 %vm472_vm1, %v462_v28 }
 0x170   : > { %1134 = vmatmul.mubr.msk.f32.vlgmr.msra.gmra.mrb[0].mxu1 %vm472_vm1, %v1130_v27 }
 0x243   : > { %v1135_v29 = vpop.f32.mrb[0].mxu1 }
 0x244   : > { %559 = vst [vmem:[#allocation2 + $0x8] sm:$0xff] %v1135_v29  ;;  %v549_v30 = vpop.f32.mrb[1].mxu1 }
 0x245   : > { %558 = vst [vmem:[#allocation2] sm:$0xff] %v549_v30 }
 0x246 PF: > { %v651_v31 = vld [vmem:[%s1873_s19] sm:$0xff]  ;;  %v652_v32 = vld [vmem:[%s1873_s19 + $0x8] sm:$0xff]  ;;  %v653_v33 = vld [vmem:[%s1873_s19 + $0x10] sm:$0xff]  ;;  %1203 = vmatprep.mubr.f32.mxu1 %v1882_v0  ;;  %1168 = vmatprep.mubr.f32.mxu0 %v1882_v0  ;;  %p1015_p3 = scmp.ne.s32.totalorder %s1620_s24, 1 }
 0x247   : > { %v1305_v34 = vpack.c.bf16 %v652_v32, %v651_v31  ;;  %v654_v35 = vld [vmem:[%s1873_s19 + $0x18] sm:$0xff]  ;;  %v655_v37 = vld [vmem:[%s1873_s19 + $0x20] sm:$0xff]  ;;  %v656_v38 = vld [vmem:[%s1873_s19 + $0x28] sm:$0xff] }
 0x248   : > { %v1309_v36 = vpack.c.bf16 %v654_v35, %v653_v33  ;;  %v560_v39 = vld [vmem:[%s1866_s20] sm:$0xff]  ;;  %v1313_v40 = vpack.c.bf16 %v656_v38, %v655_v37  ;;  %v657_v41 = vld [vmem:[%s1873_s19 + $0x30] sm:$0xff]  ;;  %v561_v42 = vld [vmem:[%s1866_s20 + $0x8] sm:$0xff] }
 0x249   : > { %1306 = vmatprep.subr.bf16.mxu1 %v1305_v34  ;;  %v658_v43 = vld [vmem:[%s1873_s19 + $0x38] sm:$0xff]  ;;  %v1273_v44 = vpack.c.bf16 %v561_v42, %v560_v39  ;;  %v562_v45 = vld [vmem:[%s1866_s20 + $0x10] sm:$0xff]  ;;  %v564_v48 = vld [vmem:[%s1866_s20 + $0x20] sm:$0xff] }
 0x24a   : > { %1308 = vmatpush3.bf16.msra.mxu1 %v1305_v34  ;;  %v563_v46 = vld [vmem:[%s1866_s20 + $0x18] sm:$0xff]  ;;  %v565_v49 = vld [vmem:[%s1866_s20 + $0x28] sm:$0xff]  ;;  %v1317_v50 = vpack.c.bf16 %v658_v43, %v657_v41  ;;  %v659_v51 = vld [vmem:[%s1873_s19 + $0x40] sm:$0xff] }
 0x24b   : > { %1310 = vmatprep.subr.bf16.mxu1 %v1309_v36  ;;  %v1277_v47 = vpack.c.bf16 %v563_v46, %v562_v45  ;;  %1274 = vmatprep.subr.bf16.mxu0 %v1273_v44  ;;  %v660_v52 = vld [vmem:[%s1873_s19 + $0x48] sm:$0xff]  ;;  %v1281_v53 = vpack.c.bf16 %v565_v49, %v564_v48  ;;  %v566_v54 = vld [vmem:[%s1866_s20 + $0x30] sm:$0xff]  ;;  %v567_v55 = vld [vmem:[%s1866_s20 + $0x38] sm:$0xff] }
 0x24c   : > { %1276 = vmatpush3.bf16.msra.mxu0 %v1273_v44  ;;  %v1321_v56 = vpack.c.bf16 %v660_v52, %v659_v51  ;;  %v661_v57 = vld [vmem:[%s1873_s19 + $0x50] sm:$0xff]  ;;  %v662_v58 = vld [vmem:[%s1873_s19 + $0x58] sm:$0xff]  ;;  %v1285_v59 = vpack.c.bf16 %v567_v55, %v566_v54  ;;  %v568_v60 = vld [vmem:[%s1866_s20 + $0x40] sm:$0xff] }
 0x24d   : > { %1278 = vmatprep.subr.bf16.mxu0 %v1277_v47  ;;  %v569_v61 = vld [vmem:[%s1866_s20 + $0x48] sm:$0xff]  ;;  %v1325_v62 = vpack.c.bf16 %v662_v58, %v661_v57  ;;  %v663_v63 = vld [vmem:[%s1873_s19 + $0x60] sm:$0xff]  ;;  %v570_v3 = vld [vmem:[%s1866_s20 + $0x50] sm:$0xff] }
 0x24e   : > { %1312 = vmatpush3.bf16.msra.mxu1 %v1309_v36  ;;  %v664_v0 = vld [vmem:[%s1873_s19 + $0x68] sm:$0xff]  ;;  %v1289_v2 = vpack.c.bf16 %v569_v61, %v568_v60  ;;  %v571_v4 = vld [vmem:[%s1866_s20 + $0x58] sm:$0xff]  ;;  %v665_v6 = vld [vmem:[%s1873_s19 + $0x70] sm:$0xff] }
 0x24f   : > { %1314 = vmatprep.subr.bf16.mxu1 %v1313_v40  ;;  %v1329_v5 = vpack.c.bf16 %v664_v0, %v663_v63  ;;  %v666_v7 = vld [vmem:[%s1873_s19 + $0x78] sm:$0xff]  ;;  %v1293_v8 = vpack.c.bf16 %v571_v4, %v570_v3  ;;  %v572_v9 = vld [vmem:[%s1866_s20 + $0x60] sm:$0xff]  ;;  %v573_v10 = vld [vmem:[%s1866_s20 + $0x68] sm:$0xff] }
 0x250   : > { %1280 = vmatpush3.bf16.msra.mxu0 %v1277_v47  ;;  %v1333_v11 = vpack.c.bf16 %v666_v7, %v665_v6  ;;  %v1297_v12 = vpack.c.bf16 %v573_v10, %v572_v9  ;;  %v574_v13 = vld [vmem:[%s1866_s20 + $0x70] sm:$0xff]  ;;  %v575_v14 = vld [vmem:[%s1866_s20 + $0x78] sm:$0xff]  ;;  %v760_v16 = vld [vmem:[%s1889_s28] sm:$0xff] }
 0x251   : > { %1282 = vmatprep.subr.bf16.mxu0 %v1281_v53  ;;  %v1301_v15 = vpack.c.bf16 %v575_v14, %v574_v13  ;;  %v761_v17 = vld [vmem:[%s1889_s28 + $0x8] sm:$0xff]  ;;  %v762_v19 = vld [vmem:[%s1889_s28 + $0x10] sm:$0xff]  ;;  %v763_v20 = vld [vmem:[%s1889_s28 + $0x18] sm:$0xff] }
 0x252   : > { %1316 = vmatpush3.bf16.msra.mxu1 %v1313_v40  ;;  %v1337_v18 = vpack.c.bf16 %v761_v17, %v760_v16  ;;  %v1341_v21 = vpack.c.bf16 %v763_v20, %v762_v19  ;;  %v764_v22 = vld [vmem:[%s1889_s28 + $0x20] sm:$0xff]  ;;  %v765_v23 = vld [vmem:[%s1889_s28 + $0x28] sm:$0xff]  ;;  %v767_v25 = vld [vmem:[%s1889_s28 + $0x38] sm:$0xff] }
 0x253   : > { %1318 = vmatprep.subr.bf16.mxu1 %v1317_v50  ;;  %v1345_v24 = vpack.c.bf16 %v765_v23, %v764_v22  ;;  %v768_v27 = vld [vmem:[%s1889_s28 + $0x40] sm:$0xff]  ;;  %v769_v28 = vld [vmem:[%s1889_s28 + $0x48] sm:$0xff]  ;;  %v770_v30 = vld [vmem:[%s1889_s28 + $0x50] sm:$0xff] }
 0x254   : > { %1284 = vmatpush3.bf16.msra.mxu0 %v1281_v53  ;;  %v1353_v29 = vpack.c.bf16 %v769_v28, %v768_v27  ;;  %v771_v31 = vld [vmem:[%s1889_s28 + $0x58] sm:$0xff]  ;;  %v772_v33 = vld [vmem:[%s1889_s28 + $0x60] sm:$0xff]  ;;  %v773_v34 = vld [vmem:[%s1889_s28 + $0x68] sm:$0xff] }
 0x255   : > { %1286 = vmatprep.subr.bf16.mxu0 %v1285_v59  ;;  %v1357_v32 = vpack.c.bf16 %v771_v31, %v770_v30  ;;  %v1361_v35 = vpack.c.bf16 %v773_v34, %v772_v33  ;;  %v774_v36 = vld [vmem:[%s1889_s28 + $0x70] sm:$0xff]  ;;  %v775_v37 = vld [vmem:[%s1889_s28 + $0x78] sm:$0xff] }
 0x256   : > { %1320 = vmatpush3.bf16.msra.mxu1 %v1317_v50  ;;  %v1365_v38 = vpack.c.bf16 %v775_v37, %v774_v36  ;;  %v759_v55 = vld [vmem:[#allocation2 + $0x8] sm:$0xff] }
 0x257   : > { %1322 = vmatprep.subr.bf16.mxu1 %v1321_v56 }
 0x258   : > { %1288 = vmatpush3.bf16.msra.mxu0 %v1285_v59 }
 0x259   : > { %1290 = vmatprep.subr.bf16.mxu0 %v1289_v2 }
 0x25a   : > { %1324 = vmatpush3.bf16.msra.mxu1 %v1321_v56  ;;  %v758_v56 = vld [vmem:[#allocation2] sm:$0xff] }
 0x25b   : > { %1326 = vmatprep.subr.bf16.mxu1 %v1325_v62 }
 0x25c   : > { %1292 = vmatpush3.bf16.msra.mxu0 %v1289_v2 }
 0x25d   : > { %1294 = vmatprep.subr.bf16.mxu0 %v1293_v8 }
 0x25e   : > { %1328 = vmatpush3.bf16.msra.mxu1 %v1325_v62 }
 0x25f   : > { %1330 = vmatprep.subr.bf16.mxu1 %v1329_v5 }
 0x260   : > { %1296 = vmatpush3.bf16.msra.mxu0 %v1293_v8 }
 0x261   : > { %1298 = vmatprep.subr.bf16.mxu0 %v1297_v12 }
 0x262   : > { %1332 = vmatpush3.bf16.msra.mxu1 %v1329_v5 }
 0x263   : > { %1334 = vmatprep.subr.bf16.mxu1 %v1333_v11 }
 0x264   : > { %1300 = vmatpush3.bf16.msra.mxu0 %v1297_v12 }
 0x265   : > { %1302 = vmatprep.subr.bf16.mxu0 %v1301_v15 }
 0x266   : > { %1336 = vmatpush3.bf16.msra.mxu1 %v1333_v11 }
 0x268   : > { %1304 = vmatpush3.bf16.msra.mxu0 %v1301_v15 }
 0x269   : > { %1204 = vmatmul.mubr.f32.vlgmr.msra.gmra.mrb[0].mxu1 %v1887_v1  ;;  %1338 = vmatprep.subr.bf16.mxu0 %v1337_v18 }
 0x26b   : > { %1169 = vmatmul.mubr.f32.vlgmr.msra.gmra.mrb[0].mxu0 %v1887_v1  ;;  %v766_v1 = vld [vmem:[%s1889_s28 + $0x30] sm:$0xff] }
 0x26c   : > { %1340 = vmatpush3.bf16.msra.mxu0 %v1337_v18  ;;  %v1349_v26 = vpack.c.bf16 %v767_v25, %v766_v1 }
 0x26d   : > { %1342 = vmatprep.subr.bf16.mxu0 %v1341_v21 }
 0x270   : > { %1344 = vmatpush3.bf16.msra.mxu0 %v1341_v21 }
 0x271   : > { %1346 = vmatprep.subr.bf16.mxu0 %v1345_v24 }
 0x274   : > { %1348 = vmatpush3.bf16.msra.mxu0 %v1345_v24 }
 0x275   : > { %1350 = vmatprep.subr.bf16.mxu0 %v1349_v26 }
 0x278   : > { %1352 = vmatpush3.bf16.msra.mxu0 %v1349_v26 }
 0x279   : > { %1354 = vmatprep.subr.bf16.mxu0 %v1353_v29 }
 0x27c   : > { %1356 = vmatpush3.bf16.msra.mxu0 %v1353_v29 }
 0x27d   : > { %1358 = vmatprep.subr.bf16.mxu0 %v1357_v32 }
 0x280   : > { %1360 = vmatpush3.bf16.msra.mxu0 %v1357_v32 }
 0x281   : > { %1362 = vmatprep.subr.bf16.mxu0 %v1361_v35 }
 0x284   : > { %1364 = vmatpush3.bf16.msra.mxu0 %v1361_v35 }
 0x285   : > { %1366 = vmatprep.subr.bf16.mxu0 %v1365_v38 }
 0x288   : > { %1368 = vmatpush3.bf16.msra.mxu0 %v1365_v38 }
 0x33c   : > { %v1205_v39 = vpop.f32.mrb[0].mxu1 }
 0x33d   : > { %v1014_v40 = vmul.f32 -1.442695, %v1205_v39  ;;  %v733_v41 = vpop.f32.mrb[1].mxu1 }
 0x33e   : > { %v1013_v42 = vmul.f32 -1.442695, %v733_v41  ;;  %v1170_v43 = vpop.f32.mrb[0].mxu0 }
 0x33f   : > { %1446 = vpow2.f32 %v1014_v40  ;;  %v642_v44 = vpop.f32.mrb[1].mxu0 }
 0x340   : > { %1448 = vpow2.f32 %v1013_v42 }
 0x349   : > { %v1447_v45 = vpop.eup %1446 }
 0x34a   : > { %v1449_v46 = vpop.eup %1448  ;;  %v749_v47 = vadd.f32 1.0, %v1447_v45 }
 0x34b   : > { %v748_v48 = vadd.f32 1.0, %v1449_v46 }
 0x34c   : > { %1450 = vrcp.f32 %v749_v47 }
 0x34d   : > { %1452 = vrcp.f32 %v748_v48 }
 0x356   : > { %v1451_v49 = vpop.eup %1450 }
 0x357   : > { %v1453_v50 = vpop.eup %1452  ;;  %v755_v51 = vmul.f32 %v1451_v49, %v1205_v39 }
 0x358   : > { %v754_v52 = vmul.f32 %v1453_v50, %v733_v41 }
 0x359   : > { %v757_v53 = vmul.f32 %v1170_v43, %v755_v51 }
 0x35a   : > { %v756_v54 = vmul.f32 %v754_v52, %v642_v44 }
 0x35c   : > { %1238 = vmatprep.mubr.f32.mxu0 %v756_v54 }
 0x35d   : > { %1239 = vmatmul.mubr.f32.vlgmr.msra.gmra.mrb[2].mxu0 %v757_v53 }
 0x42e   : > { %858 = sbr.rel (%p1015_p3) target bundleno = 1085 (0x43d), region = 64 }
 0x430   : > { %v1240_v57 = vpop.f32.mrb[2].mxu0 }
 0x431   : > { %v852_v58 = vadd.f32 %v1240_v57, %v759_v55  ;;  %v842_v59 = vpop.f32.mrb[3].mxu0 }
 0x432   : > { %v851_v60 = vadd.f32 %v842_v59, %v758_v56 }
 0x433   : > { %854 = vst [vmem:[#allocation2 + $0x8] sm:$0xff] %v852_v58 }
 0x434   : > { %853 = vst [vmem:[#allocation2] sm:$0xff] %v851_v60 }
 0x43a   : > { %v860_v62 = vld [vmem:[#allocation2 + $0x8] sm:$0xff] }
 0x43b   : > { %v859_v61 = vld [vmem:[#allocation2] sm:$0xff]  ;;  %862 = vst [vmem:[#allocation9 + $0x8] sm:$0xff] %v860_v62 }
 0x43c   : > { %861 = vst [vmem:[#allocation9] sm:$0xff] %v859_v61 }
 0x43d PF: > { %p1390_p7 = scmp.eq.s32.totalorder %s1703_s27, 1  ;;  %s1636_s20 = smov [#allocation9]  }
 0x43e   : > { %s872_s19 = sshll.u32 %s1636_s20, 4  ;;  %s873_s19 = int_to_ptr.vmem [resolvable:$true] %s872_s19 }
 0x43f   : > { %s1544_s28 = scalar_lea.vmem %s873_s19, 256  ;;  %p1551_p6 = scmp.lt.s32.totalorder %s873_s19, %s873_s19 }
 0x440   : > { %p1545_p10 = scmp.ne.s32.totalorder %s873_s19, %s1544_s28  ;;  %p1552_p8 = scmp.lt.s32.totalorder %s1544_s28, %s1544_s28 }
 0x442   : > { %p1546_p1 = pnand %p1545_p10, %p1390_p7  ;;  %p1553_p11 = por %p1552_p8, %p1551_p6 }
 0x444   : > { %p1547_p4 = pneg %p1546_p1 }
 0x446   : > { %p1554_p5 = pnand %p1553_p11, %p1547_p4 }
 0x448   : > { %1557 = shalt.err (!%p1554_p5)
}
 0x449   : > { %s1558_s11 = scalar_lea.hbm %s2045_s6, 256 }
 0x44a   : > { %p1559_p0 = scmp.ne.s32.totalorder %s2045_s6, %s1558_s11  ;;  %p1564_p12 = scmp.lt.u32.totalorder %s1558_s11, %s2045_s6 }
 0x44c   : > { %p1560_p2 = pnand %p1559_p0, %p1390_p7 }
 0x44e   : > { %p1561_p13 = pneg %p1560_p2 }
 0x450   : > { %p1566_p9 = pnand %p1564_p12, %p1561_p13 }
 0x452   : > { %1569 = shalt.err (!%p1566_p9)
}
 0x453   : > { %s1637_s21 = smov 128   ;;  %s1638_s2 = smov 8  }
 0x454   : > { %1376 = dma.vmem_to_hbm [thread:$0]  (%p1390_p7), %s873_s19, 256, %s2045_s6, [#allocation5], %s1637_s21, %s1637_s21, %s1638_s2  }
 0x455   : > { %1603 = dma.done.wait (%p1390_p7), [#allocation5], 256  }
 0x456   : > { %1605 = vsyncadd (%p1390_p7), [#allocation5], 4294967040 }
 0x457 PF: > { %s23_s26 = sadd.s32 1, %s1628_s26   ;;  %s2071_s13 = sld [smem:[#allocation13_spill]] }
 0x458   : > { %p20_p3 = scmp.ge.s32.totalorder %s23_s26, 4   ;;  %s2072_s21 = smov %s1612_s22 }
 0x459   : > { %s2073_s22 = smov %s1616_s23  ;;  %s2074_s23 = smov %s1722_s8 }
 0x45a   : > { %s2075_s24 = smov %s1624_s25  ;;  %22 = sbr.rel (!%p20_p3) target bundleno = 10 (0xa), region = 117 }
 0x45d   : > { %s2076_s25 = smov %s2071_s13 }
 0x461   :  { %888 = vsyncpa [#allocation4], 1 }
 0x462   :  { %890 = vsyncpa [#allocation4 + $0x1], 1 }
 0x463   :  { %891 = vsyncpa [#allocation7], 1 }
 0x464   :  { %893 = vsyncpa [#allocation7 + $0x1], 1 }
 0x465   :  { %894 = vsyncpa [#allocation5], 1 }
 0x466   :  { %896 = vsyncpa [#allocation5 + $0x1], 1 }

</bundles_post_ra>
